<compile_context>
chip_gen: v5e
topology: v5e:2x2
jax: 0.10.0
libtpu: 0.0.40
codegen_flags: <defaults>
</compile_context>

<pallas_src>
import functools
import math

import jax
import jax.numpy as jnp
from jax.experimental import pallas as pl
from jax.experimental.pallas import tpu as pltpu


# Finite "minus infinity": avoids inf-inf NaNs inside the online softmax.
_NEG_INF = -1e30

_G_CANDS = (16, 8, 4, 2, 1)
_SEQ_CANDS = (512, 256, 128, 64, 32, 16, 8)


# ----------------------------------------------------------------------------
# Pallas kernel: flash-style exact attention (fp32 softmax, bf16 MXU matmuls)
# ----------------------------------------------------------------------------
def _flash_attn_kernel(q_ref, k_ref, v_ref, o_ref, lse_ref,
                       q_sc, m_sc, l_sc, acc_sc, *, scale, causal, tq, tk):
    qi = pl.program_id(1)
    ki = pl.program_id(2)

    @pl.when(ki == 0)
    def _init():
        # Hoist the softmax scale out of the kv loop: scaled bf16 q is written
        # once per q block and reused for every kv step.
        q_sc[...] = (q_ref[...].astype(jnp.float32)
                     * jnp.float32(scale)).astype(q_sc.dtype)
        m_sc[...] = jnp.full(m_sc.shape, _NEG_INF, m_sc.dtype)
        l_sc[...] = jnp.zeros(l_sc.shape, l_sc.dtype)
        acc_sc[...] = jnp.zeros(acc_sc.shape, acc_sc.dtype)

    def _scores():
        k = k_ref[...].astype(jnp.bfloat16)
        # Batched over the G packed (b*h[*blocks]) slabs; fp32 accumulation.
        return jnp.einsum('gqd,gkd->gqk', q_sc[...], k,
                          preferred_element_type=jnp.float32)

    def _update(s):
        v = v_ref[...].astype(jnp.bfloat16)
        m_prev = m_sc[...]
        m_new = jnp.maximum(m_prev, jnp.max(s, axis=-1, keepdims=True))
        alpha = jnp.exp(m_prev - m_new)
        p = jnp.exp(s - m_new)
        l_sc[...] = alpha * l_sc[...] + jnp.sum(p, axis=-1, keepdims=True)
        acc_sc[...] = alpha * acc_sc[...] + jnp.einsum(
            'gqk,gkd->gqd', p.astype(jnp.bfloat16), v,
            preferred_element_type=jnp.float32)
        m_sc[...] = m_new

    if causal:
        row_min = qi * tq
        row_max = qi * tq + (tq - 1)
        col_min = ki * tk
        col_max = ki * tk + (tk - 1)

        # Fully at/below the diagonal: no mask math at all.
        @pl.when(col_max <= row_min)
        def _below():
            _update(_scores())

        # Straddles the diagonal: build the mask from (1,tq,1)/(1,1,tk) iotas.
        @pl.when(jnp.logical_and(col_max > row_min, col_min <= row_max))
        def _straddle():
            s = _scores()
            row = row_min + jax.lax.broadcasted_iota(jnp.int32, (1, tq, 1), 1)
            col = col_min + jax.lax.broadcasted_iota(jnp.int32, (1, 1, tk), 2)
            _update(jnp.where(col <= row, s, jnp.float32(_NEG_INF)))
        # Fully above the diagonal: nothing runs (and the clamped K/V
        # index_map means those tiles were never re-fetched from HBM).
    else:
        _update(_scores())

    @pl.when(ki == pl.num_programs(2) - 1)
    def _finalize():
        # EUP reciprocal instead of a VPU divide on the full accumulator.
        inv_l = pl.reciprocal(l_sc[...], approx=True)
        o_ref[...] = (acc_sc[...] * inv_l).astype(o_ref.dtype)
        lse_ref[...] = (m_sc[...] + jnp.log(l_sc[...])).astype(lse_ref.dtype)


# ----------------------------------------------------------------------------
# Tile selection: biggest tiles that fit a per-chip VMEM budget.
# ----------------------------------------------------------------------------
def _pick_tile(n, candidates):
    """Largest candidate that evenly divides n (else the full extent)."""
    for c in candidates:
        if c <= n and n % c == 0:
            return c
    return n


def _pick_div(n, candidates):
    """Largest candidate that evenly divides n (fallback 1, never full n)."""
    for c in candidates:
        if c <= n and n % c == 0:
            return c
    return 1


@functools.lru_cache(maxsize=1)
def _vmem_budget():
    """(vmem_limit_bytes, tile budget) derived from the chip's VMEM size."""
    try:
        cap = int(pltpu.get_tpu_info().vmem_capacity_bytes)
    except Exception:
        cap = 64 * 1024 * 1024  # conservative default (v7x per-TC VMEM)
    limit = min((cap * 3) // 4, 96 * 1024 * 1024)
    budget = (limit * 7) // 10
    return limit, budget


def _lane_pad(x):
    return ((x + 127) // 128) * 128


def _vmem_bytes(g, tq, tk, d, itemsize):
    """Lane-padded estimate of the per-step VMEM footprint."""
    d_p = _lane_pad(d)
    tk_p = _lane_pad(tk)
    one_p = 128  # a trailing dim of 1 pads to 128 lanes in VMEM
    # Double-buffered q/k/v/o pipeline blocks + lse block.
    io = 2 * itemsize * g * (2 * tq * d_p + 2 * tk * d_p)
    io += 2 * 4 * g * tq * one_p
    # Persistent scratch: bf16 scaled-q, fp32 m/l/acc.
    scratch = 2 * g * tq * d_p + 4 * g * tq * (2 * one_p + d_p)
    # Transient intermediates: s (fp32) + p (bf16) + ~one fp32 temp.
    inter = g * tq * tk_p * (4 + 2 + 4)
    return io + scratch + inter


def _choose_tiles(bh, nq, nk, d, itemsize, budget):
    tq = _pick_tile(nq, _SEQ_CANDS)
    tk = _pick_tile(nk, _SEQ_CANDS)
    g = _pick_div(bh, _G_CANDS)
    while _vmem_bytes(g, tq, tk, d, itemsize) > budget:
        if g > 1:
            g = _pick_div(bh, tuple(c for c in _G_CANDS if c < g))
        elif tk > 128 and nk % (tk // 2) == 0:
            tk //= 2
        elif tq > 128 and nq % (tq // 2) == 0:
            tq //= 2
        else:
            break
    return g, tq, tk


# ----------------------------------------------------------------------------
# exact_attention wrapper
# ----------------------------------------------------------------------------
def exact_attention(query, key, value, softmax_scale, causal=False, bias=None):
    """Pallas equivalent of the reference float32 `exact_attention`.

    NOTE: the PyTorch reference IGNORES `bias` for float32 inputs (it only
    forwards it to flash-attn on fp16/bf16), so it is ignored here as well.
    """
    # TODO(synk): the half-precision reference path would apply the sampled
    # block_mask bias inside flash-attn; the fp32 reference drops it, so do we.
    del bias
    b, h, nq, d = query.shape
    nk = key.shape[2]
    bh = b * h

    q3 = query.reshape(bh, nq, d)
    k3 = key.reshape(bh, nk, d)
    v3 = value.reshape(bh, nk, d)

    itemsize = jnp.dtype(query.dtype).itemsize
    vmem_limit, budget = _vmem_budget()
    g, tq, tk = _choose_tiles(bh, nq, nk, d, itemsize, budget)
    grid = (bh // g, nq // tq, nk // tk)

    kernel = functools.partial(_flash_attn_kernel, scale=float(softmax_scale),
                               causal=causal, tq=tq, tk=tk)

    if causal:
        # Clamp the kv block index so fully-above-diagonal tiles map to the
        # last valid tile and Pallas elides the (useless) re-fetch.
        def kv_map(gi, i, j):
            return (gi, jnp.minimum(j, (i * tq + tq - 1) // tk), 0)
    else:
        def kv_map(gi, i, j):
            return (gi, j, 0)

    causal_div = 2 if causal else 1
    cost = pl.CostEstimate(
        flops=4 * bh * nq * nk * d // causal_div,
        transcendentals=bh * nq * nk // causal_div,
        bytes_accessed=itemsize * bh * (2 * nq * d + 2 * nk * d) + 4 * bh * nq)

    out, lse = pl.pallas_call(
        kernel,
        out_shape=(jax.ShapeDtypeStruct((bh, nq, d), query.dtype),
                   jax.ShapeDtypeStruct((bh, nq, 1), jnp.float32)),
        grid=grid,
        in_specs=[pl.BlockSpec((g, tq, d), lambda gi, i, j: (gi, i, 0)),
                  pl.BlockSpec((g, tk, d), kv_map),
                  pl.BlockSpec((g, tk, d), kv_map)],
        out_specs=(pl.BlockSpec((g, tq, d), lambda gi, i, j: (gi, i, 0)),
                   pl.BlockSpec((g, tq, 1), lambda gi, i, j: (gi, i, 0))),
        scratch_shapes=[pltpu.VMEM((g, tq, d), jnp.bfloat16),   # scaled q
                        pltpu.VMEM((g, tq, 1), jnp.float32),    # running max
                        pltpu.VMEM((g, tq, 1), jnp.float32),    # running sum
                        pltpu.VMEM((g, tq, d), jnp.float32)],   # output accum
        compiler_params=pltpu.CompilerParams(
            dimension_semantics=("parallel", "parallel", "arbitrary"),
            vmem_limit_bytes=int(vmem_limit)),
        cost_estimate=cost,
    )(q3, k3, v3)
    return out.reshape(b, h, nq, d), lse.reshape(b, h, nq, 1)


def exact_attention_ref(query, key, value, softmax_scale, causal=False):
    """Pure-JAX reference (correctness checking only)."""
    qk = jnp.einsum('bhnd,bhmd->bhnm', query.astype(jnp.float32),
                    key.astype(jnp.float32)) * softmax_scale
    if causal:
        n, m = qk.shape[-2:]
        mask = jnp.triu(jnp.ones((n, m), jnp.float32), 1) * jnp.finfo(jnp.float32).min
        qk = qk + mask.reshape(1, 1, n, m)
    out = jnp.einsum('bhnm,bhmd->bhnd', jax.nn.softmax(qk, axis=-1),
                     value.astype(jnp.float32))
    lse = jax.nn.logsumexp(qk, axis=-1, keepdims=True)
    return out.astype(query.dtype), lse


# ----------------------------------------------------------------------------
# JAX glue matching the reference helpers
# ----------------------------------------------------------------------------
def add_self_attentions(attn1, lse1, attn2, lse2):
    c = (1.0 / (1.0 + jnp.exp(lse2 - lse1))).astype(attn1.dtype)
    attn = c * attn1 + (1.0 - c) * attn2
    lse = lse1 - jnp.log(c + jnp.finfo(lse1.dtype).eps)
    return attn, lse


def indexing(x, indices, chunk_size=-1):
    # x: [b, h, n, d], indices: [b, h, s] -> [b, h, s, d] (optionally padded)
    d = x.shape[-1]
    idx = jnp.broadcast_to(indices[..., None], indices.shape + (d,))
    gathered = jnp.take_along_axis(x, idx, axis=2)
    if chunk_size < 0 or (chunk_size > 0 and x.shape[-2] % chunk_size == 0):
        return gathered
    new_n = math.ceil(gathered.shape[2] / chunk_size) * chunk_size
    pad = new_n - gathered.shape[2]
    return jnp.pad(gathered, ((0, 0), (0, 0), (0, pad), (0, 0)))


def _unit_hamming_distance_array(size_n):
    if size_n == 1:
        return jnp.array([0, 1], dtype=jnp.int32)
    a = _unit_hamming_distance_array(size_n - 1)
    return jnp.concatenate([a, jnp.flip(a, axis=0) + 2 ** (size_n - 1)], axis=0)


class AngularLSH:
    def __init__(self, num_projs, dim, rng):
        self.num_projs = num_projs
        if num_projs > 0:
            self.proj_dir = jax.random.normal(rng, dim + (num_projs,), jnp.float32)
            self.perm = _unit_hamming_distance_array(num_projs)
            self.enc_vec = (2 ** jnp.arange(num_projs, dtype=jnp.int32)).reshape(1, 1, 1, -1)

    def hash(self, mat):
        if self.num_projs < 0:
            return jnp.zeros(mat.shape[:-1], dtype=jnp.int32)
        mask = jnp.einsum('...nd,...dr->...nr', mat.astype(jnp.float32), self.proj_dir) > 0
        bin_ids = (mask.astype(jnp.int32) * self.enc_vec).sum(-1)
        return self.perm[bin_ids]


class HyperAttention:
    def __init__(self, input_dim=64, lsh_num_projs=7, block_size=256,
                 sample_size=256, min_seq_len=4096, seed=0):
        self.input_dim = input_dim
        self.lsh_num_projs = lsh_num_projs
        self.block_size = block_size
        self.sample_size = sample_size
        self.min_seq_len = min_seq_len
        key = jax.random.PRNGKey(seed)
        lsh_key, self._sample_key = jax.random.split(key)
        self.lsh = AngularLSH(num_projs=lsh_num_projs, dim=(1, 1, input_dim), rng=lsh_key)
        self._sample_counter = 0

    # ---- top-level forward (mirrors torch forward exactly) ----
    def forward(self, query, key, value, scale=None, causal=False, return_lse=False):
        n_query = query.shape[2]
        batch_size, n_heads, n_key, dim = key.shape
        scale = dim ** (-0.5) if scale is None else scale
        if not causal:
            attn, lse = self.forward_no_causal_mask(query, key, value, scale)
        elif n_key <= self.min_seq_len:
            attn, lse = exact_attention(query, key, value, scale, causal=True)
        else:
            if n_query % 2:
                pad = ((0, 0), (0, 0), (0, 1), (0, 0))
                query = jnp.pad(query, pad)
                key = jnp.pad(key, pad)
                value = jnp.pad(value, pad)
            q_bd = query.reshape(batch_size, 2 * n_heads, query.shape[2] // 2, query.shape[-1])
            k_bd = key.reshape(batch_size, 2 * n_heads, key.shape[2] // 2, key.shape[-1])
            v_bd = value.reshape(batch_size, 2 * n_heads, key.shape[2] // 2, value.shape[-1])
            attn_bd, lse_bd = self.forward(q_bd, k_bd, v_bd, scale, True, True)
            attn_bd = attn_bd.reshape(batch_size, n_heads, -1, dim)
            lse_bd = lse_bd.reshape(batch_size, n_heads, -1, 1)
            attn_unmasked, lse_unmasked = self.forward_no_causal_mask(
                query[:, :, key.shape[2] // 2:, :],
                key[:, :, :key.shape[2] // 2, :],
                value[:, :, :key.shape[2] // 2, :], scale)
            attn_up = attn_bd[:, :, :query.shape[2] // 2, :]
            lse_up = lse_bd[:, :, :query.shape[2] // 2, :]
            attn_down, lse_down = add_self_attentions(
                attn_bd[:, :, query.shape[2] // 2:, :],
                lse_bd[:, :, query.shape[2] // 2:, :],
                attn_unmasked, lse_unmasked)
            attn = jnp.concatenate((attn_up, attn_down), axis=-2)
            lse = jnp.concatenate((lse_up, lse_down), axis=-2)
            if n_query % 2:
                attn = attn[:, :, :-1, :]
                lse = lse[:, :, :-1, :]
        if not return_lse:
            return attn
        return attn, lse

    # ---- non-causal HyperAttention (LSH-sorted block attention + sampling) ----
    def forward_no_causal_mask(self, query, key, value, scale):
        batch_size, head_size, n_query, dim = query.shape
        n_key = key.shape[2]

        if self.min_seq_len > n_query:
            return exact_attention(query, key, value, scale, causal=False)

        query_sort_idx = jnp.argsort(self.lsh.hash(query), axis=2, stable=True)
        key_sort_idx = jnp.argsort(self.lsh.hash(key), axis=2, stable=True)
        query_sort_idx_inv = jnp.argsort(query_sort_idx, axis=2, stable=True)

        key_block_size = self.block_size
        query_sorted = indexing(query, query_sort_idx, key_block_size)
        key_sorted = indexing(key, key_sort_idx, key_block_size)
        value_sorted = indexing(value, key_sort_idx, key_block_size)

        if key_block_size > 0:
            num_blocks = key_sorted.shape[2] // key_block_size
            query_block_size = query_sorted.shape[2] // num_blocks
            # Each LSH block becomes one slab on the flattened leading axis; the
            # Pallas kernel packs G of them per grid step to amortize overhead.
            q_split = query_sorted.reshape(-1, 1, query_block_size, dim)
            k_split = key_sorted.reshape(-1, 1, key_block_size, dim)
            v_split = value_sorted.reshape(-1, 1, key_block_size, dim)
            attn_block, lse_block = exact_attention(q_split, k_split, v_split,
                                                    softmax_scale=scale, causal=False)
            attn_block = attn_block.reshape(batch_size, head_size, query_sorted.shape[2], -1)
            lse_block = lse_block.reshape(batch_size, head_size, query_sorted.shape[2], -1)
            if query_sorted.shape[2] != n_query:
                attn_block = attn_block[:, :, :n_query, :]
                lse_block = lse_block[:, :, :n_query, :]
                query_sorted = query_sorted[:, :, :n_query, :]
                key_sorted = key_sorted[:, :, :n_key, :]
                value_sorted = value_sorted[:, :, :n_key, :]
        else:
            query_block_size = -1
            attn_block, lse_block = 0, 0

        sample_size = self.sample_size
        if (sample_size > 0 and n_query > query_block_size and n_key > key_block_size):
            # torch.randint -> deterministic jax.random draw (fresh key per call)
            skey = jax.random.fold_in(self._sample_key, self._sample_counter)
            self._sample_counter += 1
            sampled_set = jax.random.randint(
                skey, (batch_size, head_size, sample_size), 0, n_key, dtype=jnp.int32)
            weights = n_key / sample_size
            value_subset = indexing(value_sorted, sampled_set)
            key_subset = indexing(key_sorted, sampled_set)
            # NOTE: the reference builds `block_mask` and passes it as `bias`,
            # but its float32 exact_attention ignores bias entirely, so it is
            # omitted here to preserve exact semantics.
            attn_res, lse_res = exact_attention(query_sorted, key_subset, value_subset,
                                                scale, causal=False)
            lse_res = lse_res + math.log(weights)
            if key_block_size > 0:
                attn, lse = add_self_attentions(attn_block, lse_block, attn_res, lse_res)
            else:
                attn, lse = attn_res, lse_res
        else:
            attn, lse = attn_block, lse_block

        attn = indexing(attn, query_sort_idx_inv)
        lse = indexing(lse, query_sort_idx_inv)
        return attn, lse


# ----------------------------------------------------------------------------
if __name__ == "__main__":
    rng = jax.random.PRNGKey(0)
    kq, kk, kv, kq2, kk2, kv2 = jax.random.split(rng, 6)
    b, h, n, d = 2, 2, 16, 32
    q = jax.random.normal(kq, (b, h, n, d), jnp.float32)
    k = jax.random.normal(kk, (b, h, n, d), jnp.float32)
    v = jax.random.normal(kv, (b, h, n, d), jnp.float32)

    # 1) Tiny single-tile sanity check of the Pallas kernel.
    o_ker, lse_ker = exact_attention(q, k, v, d ** -0.5, causal=False)
    o_ref, lse_ref = exact_attention_ref(q, k, v, d ** -0.5, causal=False)
    assert jnp.allclose(o_ker, o_ref, atol=2e-2, rtol=2e-2), "attention output mismatch"
    assert jnp.allclose(lse_ker, lse_ref, atol=2e-2, rtol=2e-2), "lse mismatch"

    # 2) Multi-tile flash path: q and kv axes actually tiled (2x2 kv/q grid),
    #    exercising the causal block skip / clamp / straddle-mask branches.
    n2, d2 = 1024, 64
    q2 = jax.random.normal(kq2, (1, 2, n2, d2), jnp.float32)
    k2 = jax.random.normal(kk2, (1, 2, n2, d2), jnp.float32)
    v2 = jax.random.normal(kv2, (1, 2, n2, d2), jnp.float32)
    for cz in (False, True):
        o_t, l_t = exact_attention(q2, k2, v2, d2 ** -0.5, causal=cz)
        o_r, l_r = exact_attention_ref(q2, k2, v2, d2 ** -0.5, causal=cz)
        assert jnp.allclose(o_t, o_r, atol=2e-2, rtol=2e-2), f"tiled attn mismatch causal={cz}"
        assert jnp.allclose(l_t, l_r, atol=2e-2, rtol=2e-2), f"tiled lse mismatch causal={cz}"

    # 3) Full HyperAttention forward (small hyper-params so the LSH/block/sample
    #    and the causal recursive decomposition paths are actually exercised).
    ha = HyperAttention(input_dim=d, lsh_num_projs=3, block_size=4,
                        sample_size=4, min_seq_len=4, seed=0)
    attn, lse = ha.forward(q, k, v, causal=False, return_lse=True)
    attn_causal = ha.forward(q, k, v, causal=True)
    jax.block_until_ready((attn, lse, attn_causal))

    assert attn.shape == (b, h, n, d) and lse.shape == (b, h, n, 1)
    assert attn_causal.shape == (b, h, n, d)
    assert bool(jnp.all(jnp.isfinite(attn))) and bool(jnp.all(jnp.isfinite(lse)))
    assert bool(jnp.all(jnp.isfinite(attn_causal)))
    print("KERNEL_OK")
</pallas_src>

<mosaic_0001>
module attributes {stable_mosaic.version = 11 : i64} {
  func.func @_flash_attn_kernel(%arg0: i32, %arg1: i32, %arg2: i32, %arg3: memref<4x16x32xf32, #tpu.memory_space<vmem>>, %arg4: memref<4x16x32xf32, #tpu.memory_space<vmem>>, %arg5: memref<4x16x32xf32, #tpu.memory_space<vmem>>, %arg6: memref<4x16x32xf32, #tpu.memory_space<vmem>>, %arg7: memref<4x16x1xf32, #tpu.memory_space<vmem>>, %arg8: memref<4x16x32xbf16, #tpu.memory_space<vmem>>, %arg9: memref<4x16x1xf32, #tpu.memory_space<vmem>>, %arg10: memref<4x16x1xf32, #tpu.memory_space<vmem>>, %arg11: memref<4x16x32xf32, #tpu.memory_space<vmem>>) attributes {dimension_semantics = [#tpu.dimension_semantics<parallel>, #tpu.dimension_semantics<parallel>, #tpu.dimension_semantics<arbitrary>], iteration_bounds = array<i64: 1, 1, 1>, scalar_prefetch = 0 : i64, scratch_operands = 4 : i64, tpu.core_type = #tpu.core_type<tc>, window_params = [{transform_indices = @transform_0, window_bounds = array<i64: 4, 16, 32>}, {transform_indices = @transform_1, window_bounds = array<i64: 4, 16, 32>}, {transform_indices = @transform_2, window_bounds = array<i64: 4, 16, 32>}, {transform_indices = @transform_3, window_bounds = array<i64: 4, 16, 32>}, {transform_indices = @transform_4, window_bounds = array<i64: 4, 16, 1>}]} {
    %c0_i32 = arith.constant 0 : i32
    %0 = arith.cmpi eq, %arg2, %c0_i32 : i32
    %1 = arith.extui %0 : i1 to i32
    %c0_i32_0 = arith.constant 0 : i32
    %2 = arith.cmpi ne, %1, %c0_i32_0 : i32
    scf.if %2 {
      %c0_32 = arith.constant 0 : index
      %c0_33 = arith.constant 0 : index
      %c0_34 = arith.constant 0 : index
      %35 = vector.load %arg3[%c0_32, %c0_33, %c0_34] : memref<4x16x32xf32, #tpu.memory_space<vmem>>, vector<4x16x32xf32>
      %cst_35 = arith.constant 0.176776692 : f32
      %36 = vector.broadcast %cst_35 : f32 to vector<4x16x32xf32>
      %37 = arith.mulf %35, %36 : vector<4x16x32xf32>
      %38 = arith.truncf %37 : vector<4x16x32xf32> to vector<4x16x32xbf16>
      %c0_36 = arith.constant 0 : index
      %c0_37 = arith.constant 0 : index
      %c0_38 = arith.constant 0 : index
      %39 = vector.load %arg8[%c0_36, %c0_37, %c0_38] : memref<4x16x32xbf16, #tpu.memory_space<vmem>>, vector<4x16x32xbf16>
      tpu.vector_store %arg8[%c0_36, %c0_37, %c0_38], %38 {strides = array<i32>} : memref<4x16x32xbf16, #tpu.memory_space<vmem>>, vector<4x16x32xbf16>,
      %cst_39 = arith.constant -1.000000e+30 : f32
      %40 = vector.broadcast %cst_39 : f32 to vector<4x16x1xf32>
      %c0_40 = arith.constant 0 : index
      %c0_41 = arith.constant 0 : index
      %c0_42 = arith.constant 0 : index
      %41 = vector.load %arg9[%c0_40, %c0_41, %c0_42] : memref<4x16x1xf32, #tpu.memory_space<vmem>>, vector<4x16x1xf32>
      tpu.vector_store %arg9[%c0_40, %c0_41, %c0_42], %40 {strides = array<i32>} : memref<4x16x1xf32, #tpu.memory_space<vmem>>, vector<4x16x1xf32>,
      %cst_43 = arith.constant 0.000000e+00 : f32
      %42 = vector.broadcast %cst_43 : f32 to vector<4x16x1xf32>
      %c0_44 = arith.constant 0 : index
      %c0_45 = arith.constant 0 : index
      %c0_46 = arith.constant 0 : index
      %43 = vector.load %arg10[%c0_44, %c0_45, %c0_46] : memref<4x16x1xf32, #tpu.memory_space<vmem>>, vector<4x16x1xf32>
      tpu.vector_store %arg10[%c0_44, %c0_45, %c0_46], %42 {strides = array<i32>} : memref<4x16x1xf32, #tpu.memory_space<vmem>>, vector<4x16x1xf32>,
      %cst_47 = arith.constant 0.000000e+00 : f32
      %44 = vector.broadcast %cst_47 : f32 to vector<4x16x32xf32>
      %c0_48 = arith.constant 0 : index
      %c0_49 = arith.constant 0 : index
      %c0_50 = arith.constant 0 : index
      %45 = vector.load %arg11[%c0_48, %c0_49, %c0_50] : memref<4x16x32xf32, #tpu.memory_space<vmem>>, vector<4x16x32xf32>
      tpu.vector_store %arg11[%c0_48, %c0_49, %c0_50], %44 {strides = array<i32>} : memref<4x16x32xf32, #tpu.memory_space<vmem>>, vector<4x16x32xf32>,
    } else {
    }
    %c0 = arith.constant 0 : index
    %c0_1 = arith.constant 0 : index
    %c0_2 = arith.constant 0 : index
    %3 = vector.load %arg4[%c0, %c0_1, %c0_2] : memref<4x16x32xf32, #tpu.memory_space<vmem>>, vector<4x16x32xf32>
    %4 = arith.truncf %3 : vector<4x16x32xf32> to vector<4x16x32xbf16>
    %c0_3 = arith.constant 0 : index
    %c0_4 = arith.constant 0 : index
    %c0_5 = arith.constant 0 : index
    %5 = vector.load %arg8[%c0_3, %c0_4, %c0_5] : memref<4x16x32xbf16, #tpu.memory_space<vmem>>, vector<4x16x32xbf16>
    "tpu.trace_start"() <{level = 10 : i32, message = "gqd,gkd->gqk"}> : () -> ()
    %cst = arith.constant dense<0.000000e+00> : vector<4x16x16xf32>
    %6 = tpu.matmul %5, %4, %cst {dimension_numbers = #tpu.dot_dimension_numbers<[2], [2], [1], [1], [0, 0, 0, 1, 1, 1], [0], [0]>} : vector<4x16x32xbf16>, vector<4x16x32xbf16>, vector<4x16x16xf32> -> vector<4x16x16xf32>
    "tpu.trace_stop"() : () -> ()
    %c0_6 = arith.constant 0 : index
    %c0_7 = arith.constant 0 : index
    %c0_8 = arith.constant 0 : index
    %7 = vector.load %arg5[%c0_6, %c0_7, %c0_8] : memref<4x16x32xf32, #tpu.memory_space<vmem>>, vector<4x16x32xf32>
    %8 = arith.truncf %7 : vector<4x16x32xf32> to vector<4x16x32xbf16>
    %c0_9 = arith.constant 0 : index
    %c0_10 = arith.constant 0 : index
    %c0_11 = arith.constant 0 : index
    %9 = vector.load %arg9[%c0_9, %c0_10, %c0_11] : memref<4x16x1xf32, #tpu.memory_space<vmem>>, vector<4x16x1xf32>
    %cst_12 = arith.constant dense<0xFF800000> : vector<4x16xf32>
    %10 = vector.multi_reduction <maximumf>, %6, %cst_12 [2] : vector<4x16x16xf32> to vector<4x16xf32>
    %11 = vector.shape_cast %10 : vector<4x16xf32> to vector<4x16x1xf32>
    %12 = arith.maximumf %9, %11 : vector<4x16x1xf32>
    %13 = arith.subf %9, %12 : vector<4x16x1xf32>
    %14 = math.exp %13 : vector<4x16x1xf32>
    %15 = vector.broadcast %12 : vector<4x16x1xf32> to vector<4x16x16xf32>
    %16 = arith.subf %6, %15 : vector<4x16x16xf32>
    %17 = math.exp %16 : vector<4x16x16xf32>
    %c0_13 = arith.constant 0 : index
    %c0_14 = arith.constant 0 : index
    %c0_15 = arith.constant 0 : index
    %18 = vector.load %arg10[%c0_13, %c0_14, %c0_15] : memref<4x16x1xf32, #tpu.memory_space<vmem>>, vector<4x16x1xf32>
    %19 = arith.mulf %14, %18 : vector<4x16x1xf32>
    %cst_16 = arith.constant dense<0.000000e+00> : vector<4x16xf32>
    %20 = vector.multi_reduction <add>, %17, %cst_16 [2] : vector<4x16x16xf32> to vector<4x16xf32>
    %21 = vector.shape_cast %20 : vector<4x16xf32> to vector<4x16x1xf32>
    %22 = arith.addf %19, %21 : vector<4x16x1xf32>
    %c0_17 = arith.constant 0 : index
    %c0_18 = arith.constant 0 : index
    %c0_19 = arith.constant 0 : index
    %23 = vector.load %arg10[%c0_17, %c0_18, %c0_19] : memref<4x16x1xf32, #tpu.memory_space<vmem>>, vector<4x16x1xf32>
    tpu.vector_store %arg10[%c0_17, %c0_18, %c0_19], %22 {strides = array<i32>} : memref<4x16x1xf32, #tpu.memory_space<vmem>>, vector<4x16x1xf32>,
    %c0_20 = arith.constant 0 : index
    %c0_21 = arith.constant 0 : index
    %c0_22 = arith.constant 0 : index
    %24 = vector.load %arg11[%c0_20, %c0_21, %c0_22] : memref<4x16x32xf32, #tpu.memory_space<vmem>>, vector<4x16x32xf32>
    %25 = vector.broadcast %14 : vector<4x16x1xf32> to vector<4x16x32xf32>
    %26 = arith.mulf %25, %24 : vector<4x16x32xf32>
    %27 = arith.truncf %17 : vector<4x16x16xf32> to vector<4x16x16xbf16>
    "tpu.trace_start"() <{level = 10 : i32, message = "gqk,gkd->gqd"}> : () -> ()
    %cst_23 = arith.constant dense<0.000000e+00> : vector<4x16x32xf32>
    %28 = tpu.matmul %27, %8, %cst_23 {dimension_numbers = #tpu.dot_dimension_numbers<[2], [1], [1], [2], [0, 0, 0, 1, 1, 2], [0], [0]>} : vector<4x16x16xbf16>, vector<4x16x32xbf16>, vector<4x16x32xf32> -> vector<4x16x32xf32>
    "tpu.trace_stop"() : () -> ()
    %29 = arith.addf %26, %28 : vector<4x16x32xf32>
    %c0_24 = arith.constant 0 : index
    %c0_25 = arith.constant 0 : index
    %c0_26 = arith.constant 0 : index
    %30 = vector.load %arg11[%c0_24, %c0_25, %c0_26] : memref<4x16x32xf32, #tpu.memory_space<vmem>>, vector<4x16x32xf32>
    tpu.vector_store %arg11[%c0_24, %c0_25, %c0_26], %29 {strides = array<i32>} : memref<4x16x32xf32, #tpu.memory_space<vmem>>, vector<4x16x32xf32>,
    %c0_27 = arith.constant 0 : index
    %c0_28 = arith.constant 0 : index
    %c0_29 = arith.constant 0 : index
    %31 = vector.load %arg9[%c0_27, %c0_28, %c0_29] : memref<4x16x1xf32, #tpu.memory_space<vmem>>, vector<4x16x1xf32>
    tpu.vector_store %arg9[%c0_27, %c0_28, %c0_29], %12 {strides = array<i32>} : memref<4x16x1xf32, #tpu.memory_space<vmem>>, vector<4x16x1xf32>,
    %c0_i32_30 = arith.constant 0 : i32
    %32 = arith.cmpi eq, %arg2, %c0_i32_30 : i32
    %33 = arith.extui %32 : i1 to i32
    %c0_i32_31 = arith.constant 0 : i32
    %34 = arith.cmpi ne, %33, %c0_i32_31 : i32
    scf.if %34 {
      %c0_32 = arith.constant 0 : index
      %c0_33 = arith.constant 0 : index
      %c0_34 = arith.constant 0 : index
      %35 = vector.load %arg10[%c0_32, %c0_33, %c0_34] : memref<4x16x1xf32, #tpu.memory_space<vmem>>, vector<4x16x1xf32>
      %36 = tpu.reciprocal %35 {approx = true} : vector<4x16x1xf32> -> vector<4x16x1xf32>
      %c0_35 = arith.constant 0 : index
      %c0_36 = arith.constant 0 : index
      %c0_37 = arith.constant 0 : index
      %37 = vector.load %arg11[%c0_35, %c0_36, %c0_37] : memref<4x16x32xf32, #tpu.memory_space<vmem>>, vector<4x16x32xf32>
      %38 = vector.broadcast %36 : vector<4x16x1xf32> to vector<4x16x32xf32>
      %39 = arith.mulf %37, %38 : vector<4x16x32xf32>
      %c0_38 = arith.constant 0 : index
      %c0_39 = arith.constant 0 : index
      %c0_40 = arith.constant 0 : index
      %40 = vector.load %arg6[%c0_38, %c0_39, %c0_40] : memref<4x16x32xf32, #tpu.memory_space<vmem>>, vector<4x16x32xf32>
      tpu.vector_store %arg6[%c0_38, %c0_39, %c0_40], %39 {strides = array<i32>} : memref<4x16x32xf32, #tpu.memory_space<vmem>>, vector<4x16x32xf32>,
      %c0_41 = arith.constant 0 : index
      %c0_42 = arith.constant 0 : index
      %c0_43 = arith.constant 0 : index
      %41 = vector.load %arg9[%c0_41, %c0_42, %c0_43] : memref<4x16x1xf32, #tpu.memory_space<vmem>>, vector<4x16x1xf32>
      %c0_44 = arith.constant 0 : index
      %c0_45 = arith.constant 0 : index
      %c0_46 = arith.constant 0 : index
      %42 = vector.load %arg10[%c0_44, %c0_45, %c0_46] : memref<4x16x1xf32, #tpu.memory_space<vmem>>, vector<4x16x1xf32>
      %43 = math.log %42 : vector<4x16x1xf32>
      %44 = arith.addf %41, %43 : vector<4x16x1xf32>
      %c0_47 = arith.constant 0 : index
      %c0_48 = arith.constant 0 : index
      %c0_49 = arith.constant 0 : index
      %45 = vector.load %arg7[%c0_47, %c0_48, %c0_49] : memref<4x16x1xf32, #tpu.memory_space<vmem>>, vector<4x16x1xf32>
      tpu.vector_store %arg7[%c0_47, %c0_48, %c0_49], %44 {strides = array<i32>} : memref<4x16x1xf32, #tpu.memory_space<vmem>>, vector<4x16x1xf32>,
    } else {
    }
    return
  }
  func.func @transform_0(%arg0: i32, %arg1: i32, %arg2: i32) -> (i32, i32, i32) {
    %c0_i32 = arith.constant 0 : i32
    %c0_i32_0 = arith.constant 0 : i32
    return %arg0, %arg1, %c0_i32 : i32, i32, i32
  }
  func.func @transform_1(%arg0: i32, %arg1: i32, %arg2: i32) -> (i32, i32, i32) {
    %c0_i32 = arith.constant 0 : i32
    %c0_i32_0 = arith.constant 0 : i32
    return %arg0, %arg2, %c0_i32 : i32, i32, i32
  }
  func.func @transform_2(%arg0: i32, %arg1: i32, %arg2: i32) -> (i32, i32, i32) {
    %c0_i32 = arith.constant 0 : i32
    %c0_i32_0 = arith.constant 0 : i32
    return %arg0, %arg2, %c0_i32 : i32, i32, i32
  }
  func.func @transform_3(%arg0: i32, %arg1: i32, %arg2: i32) -> (i32, i32, i32) {
    %c0_i32 = arith.constant 0 : i32
    %c0_i32_0 = arith.constant 0 : i32
    return %arg0, %arg1, %c0_i32 : i32, i32, i32
  }
  func.func @transform_4(%arg0: i32, %arg1: i32, %arg2: i32) -> (i32, i32, i32) {
    %c0_i32 = arith.constant 0 : i32
    %c0_i32_0 = arith.constant 0 : i32
    return %arg0, %arg1, %c0_i32 : i32, i32, i32
  }
}

</mosaic_0001>

<bundles_post_ra>
// kernel: tpu_custom_call.1
= control target key start
LH: loop header
LB: loop body
LE: loop exit
PB: predicated region body
PF: predicated region fallthrough
CT: control target
= control target key end

     0   :  { %10 = vsyncpa [#allocation7], 0  ;;  %s1324_s0 = inlined_call_operand.hbm [shape: f32[4,16,32], index: 0, kind: input, shape index: {}]   ;;  %s1325_s1 = inlined_call_operand.hbm [shape: f32[4,16,32], index: 1, kind: input, shape index: {}]   ;;  %s1326_s2 = inlined_call_operand.hbm [shape: f32[4,16,32], index: 2, kind: input, shape index: {}]   ;;  %s1327_s3 = inlined_call_operand.hbm [shape: f32[4,16,32], index: 3, kind: output, shape index: {0}]   ;;  %s1328_s4 = inlined_call_operand.vmem [shape: f32[4,16,1], index: 4, kind: output, shape index: {1}]  }
   0x1   :  { %11 = vsyncpa [#allocation10], 0 }
   0x2   :  { %12 = vsyncpa [#allocation8], 0  ;;  %s30_s17 = sshll.u32 %s1325_s1, 4  ;;  %s1036_s18 = smov [#allocation9]   ;;  %s31_s17 = int_to_ptr.hbm [resolvable:$true] %s30_s17 }
   0x3   :  { %s32_s19 = sshll.u32 %s1036_s18, 4  ;;  %s17_s22 = sshll.u32 %s1324_s0, 4  ;;  %s33_s19 = int_to_ptr.vmem [resolvable:$true] %s32_s19  ;;  %s18_s22 = int_to_ptr.hbm [resolvable:$true] %s17_s22 }
   0x4   :  { %s1037_s23 = smov 128   ;;  %s1038_s24 = smov 8  }
   0x5   :  { %38 = dma.hbm_to_vmem [thread:$0]  %s31_s17, 1024, %s33_s19, [#allocation10], %s1037_s23, %s1037_s23, %s1038_s24  }
   0x6   :  { %s1039_s25 = smov [#allocation6]   ;;  %s43_s1 = sshll.u32 %s1326_s2, 4  ;;  %s44_s1 = int_to_ptr.hbm [resolvable:$true] %s43_s1 }
   0x7   :  { %s19_s26 = sshll.u32 %s1039_s25, 4  ;;  %s1040_s0 = smov [#allocation11]   ;;  %s20_s26 = int_to_ptr.vmem [resolvable:$true] %s19_s26 }
   0x8   :  { %25 = dma.hbm_to_vmem [thread:$0]  %s18_s22, 1024, %s20_s26, [#allocation7], %s1037_s23, %s1037_s23, %s1038_s24  }
   0x9   :  { %s45_s29 = sshll.u32 %s1040_s0, 4  ;;  %s46_s29 = int_to_ptr.vmem [resolvable:$true] %s45_s29 }
   0xa   :  { %51 = dma.hbm_to_vmem [thread:$0]  %s44_s1, 1024, %s46_s29, [#allocation10], %s1037_s23, %s1037_s23, %s1038_s24  }
   0xb   :  { %1030 = dma.done.wait [#allocation7], 1024  }
   0xc   :  { %1031 = vsyncadd [#allocation7], 4294966272 }
   0xd   :  { %1032 = dma.done.wait [#allocation10], 2048  }
   0xe   :  { %1033 = vsyncadd [#allocation10], 4294965248  ;;  %v128_v0 = vld [vmem:[#allocation9] sm:$0xff]  ;;  %v129_v1 = vld [vmem:[#allocation9 + $0x8] sm:$0xff]  ;;  %vm119_vm0 = vcmask 261120   ;;  %vm93_vm1 = vcmask 257024  }
   0xf   :  { %v130_v2 = vld [vmem:[#allocation9 + $0x10] sm:$0xff]  ;;  %v136_v3 = vpack.c.bf16 %v128_v0, %v128_v0  ;;  %v137_v4 = vpack.c.bf16 %v129_v1, %v129_v1  ;;  %v131_v5 = vld [vmem:[#allocation9 + $0x18] sm:$0xff]  ;;  %v132_v7 = vld [vmem:[#allocation9 + $0x20] sm:$0xff]  ;;  %vm297_vm2 = vcmask 130048   ;;  %vm102_vm3 = vcmask 7168   ;;  %s812_s22 = sshll.u32 %s1327_s3, 4  ;;  %s813_s22 = int_to_ptr.hbm [resolvable:$true] %s812_s22 }
  0x10   :  { %v138_v6 = vpack.c.bf16 %v130_v2, %v130_v2  ;;  %v133_v8 = vld [vmem:[#allocation9 + $0x28] sm:$0xff]  ;;  %v139_v9 = vpack.c.bf16 %v131_v5, %v131_v5  ;;  %v140_v10 = vpack.c.bf16 %v132_v7, %v132_v7  ;;  %v134_v12 = vld [vmem:[#allocation9 + $0x30] sm:$0xff]  ;;  %v135_v13 = vld [vmem:[#allocation9 + $0x38] sm:$0xff]  ;;  %v1041_v60 = vmov -1e+30  }
  0x11   :  { %v141_v11 = vpack.c.bf16 %v133_v8, %v133_v8  ;;  %v69_v14 = vld [vmem:[#allocation6] sm:$0xff]  ;;  %v159_v15 = vunpack.c.l.b16 %v136_v3  ;;  %v160_v16 = vunpack.c.l.b16 %v137_v4  ;;  %v142_v18 = vpack.c.bf16 %v134_v12, %v134_v12  ;;  %v70_v19 = vld [vmem:[#allocation6 + $0x8] sm:$0xff]  ;;  %v71_v20 = vld [vmem:[#allocation6 + $0x10] sm:$0xff]  ;;  %105 = vst.msk [vmem:[#allocation3 + $0x10] sm:$0xff] %vm102_vm3, %v1041_v60 }
  0x12   :  { %v190_v17 = vunpack.c.l.b16 %v138_v6  ;;  %v191_v21 = vunpack.c.l.b16 %v139_v9  ;;  %v220_v22 = vunpack.c.l.b16 %v140_v10  ;;  %v143_v24 = vpack.c.bf16 %v135_v13, %v135_v13  ;;  %v72_v25 = vld [vmem:[#allocation6 + $0x18] sm:$0xff]  ;;  %v73_v34 = vld [vmem:[#allocation6 + $0x20] sm:$0xff]  ;;  %v74_v35 = vld [vmem:[#allocation6 + $0x28] sm:$0xff]  ;;  %103 = vst.msk [vmem:[#allocation3] sm:$0xff] %vm102_vm3, %v1041_v60 }
  0x13   :  { %v221_v23 = vunpack.c.l.b16 %v141_v11  ;;  %v161_v26 = vpack.c.b16 %v160_v16, %v159_v15  ;;  %v250_v27 = vunpack.c.l.b16 %v142_v18  ;;  %v77_v28 = vmul.f32 0.17677669, %v69_v14  ;;  %v75_v40 = vld [vmem:[#allocation6 + $0x30] sm:$0xff]  ;;  %v76_v45 = vld [vmem:[#allocation6 + $0x38] sm:$0xff]  ;;  %104 = vst.msk [vmem:[#allocation3 + $0x8] sm:$0xff] %vm102_vm3, %v1041_v60 }
  0x14   :  { %v78_v29 = vmul.f32 0.17677669, %v70_v19  ;;  %v192_v30 = vpack.c.b16 %v191_v21, %v190_v17  ;;  %v251_v32 = vunpack.c.l.b16 %v143_v24  ;;  %v79_v33 = vmul.f32 0.17677669, %v71_v20  ;;  %106 = vst.msk [vmem:[#allocation3 + $0x18] sm:$0xff] %vm102_vm3, %v1041_v60 }
  0x15   :  { %v222_v31 = vpack.c.b16 %v221_v23, %v220_v22  ;;  %v167_v36 = vsel %vm119_vm0, %v161_v26, 0  ;;  %v85_v37 = vpack.c.bf16 %v77_v28, %v77_v28  ;;  %v80_v39 = vmul.f32 0.17677669, %v72_v25  ;;  %107 = vst.msk [vmem:[#allocation3 + $0x20] sm:$0xff] %vm102_vm3, %v1041_v60 }
  0x16   :  { %v86_v38 = vpack.c.bf16 %v78_v29, %v78_v29  ;;  %176 = vmatpush.bf16.xpose.msra.mxu0 %v167_v36  ;;  %v197_v41 = vsel %vm119_vm0, %v192_v30, 0  ;;  %v252_v43 = vpack.c.b16 %v251_v32, %v250_v27  ;;  %v87_v44 = vpack.c.bf16 %v79_v33, %v79_v33  ;;  %108 = vst.msk [vmem:[#allocation3 + $0x28] sm:$0xff] %vm102_vm3, %v1041_v60 }
  0x17   :  { %v227_v42 = vsel %vm119_vm0, %v222_v31, 0  ;;  %206 = vmatpush.bf16.xpose.msra.mxu1 %v197_v41  ;;  %94 = vst.msk [vmem:[#allocation2] sm:$0xf] %vm93_vm1, %v85_v37  ;;  %v88_v46 = vpack.c.bf16 %v80_v39, %v80_v39  ;;  %v81_v47 = vmul.f32 0.17677669, %v73_v34  ;;  %v1042_v13 = vmov 0  }
  0x18   :  { %236 = vmatpush.bf16.xpose.msra.mxu2 %v227_v42  ;;  %v82_v48 = vmul.f32 0.17677669, %v74_v35  ;;  %v257_v49 = vsel %vm119_vm0, %v252_v43, 0  ;;  %95 = vst.msk [vmem:[#allocation2 + $0x4] sm:$0xf] %vm93_vm1, %v86_v38  ;;  %869 = vset.pattern.permute.xlu1 %v1042_v13  ;;  %v1043_v14 = vmov 0.0  }
  0x19   :  { %v83_v50 = vmul.f32 0.17677669, %v75_v40  ;;  %266 = vmatpush.bf16.xpose.msra.mxu3 %v257_v49  ;;  %96 = vst.msk [vmem:[#allocation2 + $0x8] sm:$0xf] %vm93_vm1, %v87_v44  ;;  %v89_v51 = vpack.c.bf16 %v81_v47, %v81_v47  ;;  %v84_v53 = vmul.f32 0.17677669, %v76_v45  ;;  %867 = vset.pattern.permute.xlu2 %v1042_v13 }
  0x1a   :  { %v90_v52 = vpack.c.bf16 %v82_v48, %v82_v48  ;;  %97 = vst.msk [vmem:[#allocation2 + $0xc] sm:$0xf] %vm93_vm1, %v88_v46  ;;  %868 = vset.pattern.permute.xlu0 %v1042_v13  ;;  %v289_v15 = vld [vmem:[#allocation3] sm:$0xff]  ;;  %v291_v16 = vld [vmem:[#allocation3 + $0x10] sm:$0xff]  ;;  %v290_v21 = vld [vmem:[#allocation3 + $0x8] sm:$0xff] }
  0x1b   :  { %v91_v54 = vpack.c.bf16 %v83_v50, %v83_v50  ;;  %98 = vst.msk [vmem:[#allocation2 + $0x10] sm:$0xf] %vm93_vm1, %v89_v51  ;;  %v92_v55 = vpack.c.bf16 %v84_v53, %v84_v53  ;;  %v292_v33 = vld [vmem:[#allocation3 + $0x18] sm:$0xff] }
  0x1c   :  { %99 = vst.msk [vmem:[#allocation2 + $0x14] sm:$0xf] %vm93_vm1, %v90_v52  ;;  %v293_v22 = vld [vmem:[#allocation3 + $0x20] sm:$0xff] }
  0x1d   :  { %100 = vst.msk [vmem:[#allocation2 + $0x18] sm:$0xf] %vm93_vm1, %v91_v54  ;;  %v294_v31 = vld [vmem:[#allocation3 + $0x28] sm:$0xff] }
  0x1e   :  { %101 = vst.msk [vmem:[#allocation2 + $0x1c] sm:$0xf] %vm93_vm1, %v92_v55 }
  0x1f   :  { %v854_v56 = vld [vmem:[#allocation2] sm:$0xff]  ;;  %109 = vst.msk [vmem:[#allocation3 + $0x30] sm:$0xff] %vm102_vm3, %v1041_v60 }
  0x20   :  { %834 = vmatmul.msk.bf16.vlgmr.msra.gmra.mxu0 %vm119_vm0, %v854_v56  ;;  %110 = vst.msk [vmem:[#allocation3 + $0x38] sm:$0xff] %vm102_vm3, %v1041_v60 }
  0x21   :  { %v855_v57 = vld [vmem:[#allocation2 + $0x8] sm:$0xff]  ;;  %121 = vst.msk [vmem:[#allocation5 + $0x8] sm:$0xff] %vm119_vm0, %v1043_v14 }
  0x22   :  { %839 = vmatmul.msk.bf16.vlgmr.msra.gmra.mxu1 %vm119_vm0, %v855_v57  ;;  %111 = vst.msk [vmem:[#allocation4] sm:$0xff] %vm102_vm3, %v1043_v14 }
  0x23   :  { %v856_v58 = vld [vmem:[#allocation2 + $0x10] sm:$0xff]  ;;  %112 = vst.msk [vmem:[#allocation4 + $0x8] sm:$0xff] %vm102_vm3, %v1043_v14 }
  0x24   :  { %844 = vmatmul.msk.bf16.vlgmr.msra.gmra.mxu2 %vm119_vm0, %v856_v58  ;;  %113 = vst.msk [vmem:[#allocation4 + $0x10] sm:$0xff] %vm102_vm3, %v1043_v14 }
  0x25   :  { %v857_v59 = vld [vmem:[#allocation2 + $0x18] sm:$0xff]  ;;  %114 = vst.msk [vmem:[#allocation4 + $0x18] sm:$0xff] %vm102_vm3, %v1043_v14 }
  0x26   :  { %849 = vmatmul.msk.bf16.vlgmr.msra.gmra.mxu3 %vm119_vm0, %v857_v59  ;;  %115 = vst.msk [vmem:[#allocation4 + $0x20] sm:$0xff] %vm102_vm3, %v1043_v14  ;;  %v295_v25 = vld [vmem:[#allocation3 + $0x30] sm:$0xff] }
  0x27   :  { %116 = vst.msk [vmem:[#allocation4 + $0x28] sm:$0xff] %vm102_vm3, %v1043_v14  ;;  %v1167_v41 = vld [vmem:[#allocation3 + $0x38] sm:$0xff] }
  0x28   :  { %117 = vst.msk [vmem:[#allocation4 + $0x30] sm:$0xff] %vm102_vm3, %v1043_v14 }
  0x29   :  { %118 = vst.msk [vmem:[#allocation4 + $0x38] sm:$0xff] %vm102_vm3, %v1043_v14 }
  0x2a   :  { %120 = vst.msk [vmem:[#allocation5] sm:$0xff] %vm119_vm0, %v1043_v14 }
  0x2b   :  { %122 = vst.msk [vmem:[#allocation5 + $0x10] sm:$0xff] %vm119_vm0, %v1043_v14 }
  0x2c   :  { %123 = vst.msk [vmem:[#allocation5 + $0x18] sm:$0xff] %vm119_vm0, %v1043_v14 }
  0x2d   :  { %124 = vst.msk [vmem:[#allocation5 + $0x20] sm:$0xff] %vm119_vm0, %v1043_v14 }
  0x2e   :  { %125 = vst.msk [vmem:[#allocation5 + $0x28] sm:$0xff] %vm119_vm0, %v1043_v14 }
  0x2f   :  { %126 = vst.msk [vmem:[#allocation5 + $0x30] sm:$0xff] %vm119_vm0, %v1043_v14 }
  0x30   :  { %127 = vst.msk [vmem:[#allocation5 + $0x38] sm:$0xff] %vm119_vm0, %v1043_v14 }
  0x9d   :  { %v1105_v61 = vpop.f32.mrf.mxu0 }
  0x9e   :  { %v298_v62 = vsel %vm297_vm2, %v1105_v61, -inf }
  0x9f   :  { %v1111_v63 = vpop.f32.mrf.mxu1  ;;  %299 = vmax.xlane.f32.xlu2 %v298_v62 }
  0xa0   :  { %v304_v0 = vsel %vm297_vm2, %v1111_v63, -inf }
  0xa1   :  { %305 = vmax.xlane.f32.xlu0 %v304_v0  ;;  %v279_v0 = vld [vmem:[#allocation11 + $0x30] sm:$0xff] }
  0xa5   :  { %v1120_v1 = vpop.f32.mrf.mxu0 }
  0xa6   :  { %v301_v2 = vsel %vm297_vm2, %v1120_v1, -inf }
  0xa7   :  { %v1124_v3 = vpop.f32.mrf.mxu2  ;;  %302 = vmax.xlane.f32.xlu2 %v301_v2  ;;  %v1132_v7 = vpop.f32.mrf.mxu1  ;;  %v280_v2 = vld [vmem:[#allocation11 + $0x38] sm:$0xff] }
  0xa8   :  { %v310_v4 = vsel %vm297_vm2, %v1124_v3, -inf  ;;  %v307_v10 = vsel %vm297_vm2, %v1132_v7, -inf }
  0xa9   :  { %v1128_v5 = vpop.f32.mrf.mxu3  ;;  %311 = vmax.xlane.f32.xlu0 %v310_v4  ;;  %v287_v4 = vpack.c.bf16 %v279_v0, %v279_v0 }
  0xaa   :  { %v316_v6 = vsel %vm297_vm2, %v1128_v5, -inf }
  0xab   :  { %317 = vmax.xlane.f32.xlu1 %v316_v6  ;;  %v288_v6 = vpack.c.bf16 %v280_v2, %v280_v2 }
  0xaf   :  { %v1134_v8 = vpop.f32.mrf.mxu2 }
  0xb0   :  { %v313_v9 = vsel %vm297_vm2, %v1134_v8, -inf }
  0xb1   :  { %314 = vmax.xlane.f32.xlu0 %v313_v9  ;;  %v1140_v11 = vpop.f32.mrf.mxu3  ;;  %v630_v9 = vunpack.c.l.b16 %v287_v4 }
  0xb2   :  { %v319_v12 = vsel %vm297_vm2, %v1140_v11, -inf }
  0xb3   :  { %308 = vmax.xlane.f32.xlu1 %v307_v10  ;;  %v631_v10 = vunpack.c.l.b16 %v288_v6 }
  0xbb   :  { %320 = vmax.xlane.f32.xlu1 %v319_v12  ;;  %v632_v12 = vpack.c.b16 %v631_v10, %v630_v9 }
  0xbd   :  { %644 = vmatpush.bf16.msrb.mxu3 %v632_v12 }
 0x112   :  { %v300_v17 = vpop.xlane.xlu2 %299 }
 0x113   :  { %v322_v18 = vmax.f32 %v289_v15, %v300_v17 }
 0x114   :  { %v306_v19 = vpop.xlane.xlu0 %305 }
 0x115   :  { %v324_v20 = vmax.f32 %v291_v16, %v306_v19  ;;  %667 = vst.msk [vmem:[#allocation3] sm:$0xff] %vm102_vm3, %v322_v18  ;;  %v330_v39 = vsub.f32 %v289_v15, %v322_v18  ;;  %v273_v15 = vld [vmem:[#allocation11] sm:$0xff] }
 0x116   :  { %v281_v19 = vpack.c.bf16 %v273_v15, %v273_v15 }
 0x117   :  { %669 = vst.msk [vmem:[#allocation3 + $0x10] sm:$0xff] %vm102_vm3, %v324_v20  ;;  %v332_v30 = vsub.f32 %v291_v16, %v324_v20  ;;  %v338_v43 = vmul.f32 1.442695, %v330_v39  ;;  %v274_v16 = vld [vmem:[#allocation11 + $0x8] sm:$0xff] }
 0x119   :  { %v342_v32 = vmul.f32 1.442695, %v332_v30 }
 0x11a   :  { %v303_v23 = vpop.xlane.xlu2 %302 }
 0x11b   :  { %v323_v24 = vmax.f32 %v290_v21, %v303_v23  ;;  %870 = vpow2.f32 %v342_v32  ;;  %v275_v32 = vld [vmem:[#allocation11 + $0x10] sm:$0xff] }
 0x11c   :  { %v312_v26 = vpop.xlane.xlu0 %311 }
 0x11d   :  { %v326_v27 = vmax.f32 %v293_v22, %v312_v26  ;;  %668 = vst.msk [vmem:[#allocation3 + $0x8] sm:$0xff] %vm102_vm3, %v323_v24  ;;  %v331_v46 = vsub.f32 %v290_v21, %v323_v24  ;;  %v277_v21 = vld [vmem:[#allocation11 + $0x20] sm:$0xff] }
 0x11e   :  { %v318_v28 = vpop.xlane.xlu1 %317 }
 0x11f   :  { %v328_v29 = vmax.f32 %v295_v25, %v318_v28  ;;  %671 = vst.msk [vmem:[#allocation3 + $0x20] sm:$0xff] %vm102_vm3, %v326_v27  ;;  %376 = vperm.xlu2 %867, %v326_v27   ;;  %v334_v38 = vsub.f32 %v293_v22, %v326_v27  ;;  %v340_v49 = vmul.f32 1.442695, %v331_v46  ;;  %v546_v22 = vunpack.c.l.b16 %v281_v19 }
 0x121   :  { %673 = vst.msk [vmem:[#allocation3 + $0x30] sm:$0xff] %vm102_vm3, %v328_v29  ;;  %386 = vperm.xlu1 %869, %v328_v29   ;;  %v346_v40 = vmul.f32 1.442695, %v334_v38  ;;  %v1169_v42 = vpop.eup %870  ;;  %v336_v48 = vsub.f32 %v295_v25, %v328_v29  ;;  %v285_v25 = vpack.c.bf16 %v277_v21, %v277_v21 }
 0x123   :  { %872 = vpow2.f32 %v346_v40  ;;  %v350_v51 = vmul.f32 1.442695, %v336_v48  ;;  %v602_v29 = vunpack.c.l.b16 %v285_v25 }
 0x124   :  { %v315_v34 = vpop.xlane.xlu0 %314  ;;  %874 = vpow2.f32 %v338_v43 }
 0x125   :  { %v327_v35 = vmax.f32 %v294_v31, %v315_v34  ;;  %876 = vpow2.f32 %v340_v49 }
 0x126   :  { %v309_v36 = vpop.xlane.xlu1 %308  ;;  %878 = vpow2.f32 %v350_v51 }
 0x127   :  { %v325_v37 = vmax.f32 %v292_v33, %v309_v36  ;;  %672 = vst.msk [vmem:[#allocation3 + $0x28] sm:$0xff] %vm102_vm3, %v327_v35  ;;  %381 = vperm.xlu0 %868, %v327_v35   ;;  %356 = vperm.xlu2 %867, %v322_v18   ;;  %v335_v53 = vsub.f32 %v294_v31, %v327_v35 }
 0x128   :  { %v283_v35 = vpack.c.bf16 %v275_v32, %v275_v32 }
 0x129   :  { %670 = vst.msk [vmem:[#allocation3 + $0x18] sm:$0xff] %vm102_vm3, %v325_v37  ;;  %361 = vperm.xlu1 %869, %v323_v24   ;;  %v1180_v50 = vpop.eup %872  ;;  %v333_v54 = vsub.f32 %v292_v33, %v325_v37  ;;  %v348_v55 = vmul.f32 1.442695, %v335_v53  ;;  %v278_v24 = vld [vmem:[#allocation11 + $0x28] sm:$0xff]  ;;  %v276_v33 = vld [vmem:[#allocation11 + $0x18] sm:$0xff] }
 0x12a   :  { %v1183_v52 = vpop.eup %874  ;;  %v286_v26 = vpack.c.bf16 %v278_v24, %v278_v24  ;;  %v284_v36 = vpack.c.bf16 %v276_v33, %v276_v33  ;;  %v574_v38 = vunpack.c.l.b16 %v283_v35 }
 0x12b   :  { %v344_v56 = vmul.f32 1.442695, %v333_v54  ;;  %v1186_v57 = vpop.eup %876  ;;  %880 = vpow2.f32 %v348_v55 }
 0x12c   :  { %v1188_v58 = vpop.eup %878  ;;  %v603_v30 = vunpack.c.l.b16 %v286_v26  ;;  %v575_v39 = vunpack.c.l.b16 %v284_v36 }
 0x12d   :  { %882 = vpow2.f32 %v344_v56 }
 0x12e   :  { %v321_v44 = vpop.xlane.xlu1 %320  ;;  %v604_v31 = vpack.c.b16 %v603_v30, %v602_v29  ;;  %v576_v43 = vpack.c.b16 %v575_v39, %v574_v38  ;;  %v418_v39 = vld [vmem:[#allocation4] sm:$0xff] }
 0x12f   :  { %v1172_v45 = vmax.f32 %v1167_v41, %v321_v44  ;;  %495 = vperm.xlu0 %868, %v1169_v42  }
 0x130   :  { %616 = vmatpush.bf16.msrb.mxu2 %v604_v31  ;;  %588 = vmatpush.bf16.msrb.mxu1 %v576_v43 }
 0x131   :  { %v337_v47 = vsub.f32 %v1167_v41, %v1172_v45  ;;  %674 = vst.msk [vmem:[#allocation3 + $0x38] sm:$0xff] %vm102_vm3, %v1172_v45  ;;  %371 = vperm.xlu1 %869, %v325_v37   ;;  %391 = vperm.xlu2 %867, %v1172_v45   ;;  %v1192_v59 = vpop.eup %880 }
 0x133   :  { %v1194_v60 = vpop.eup %882 }
 0x137   :  { %505 = vperm.xlu0 %868, %v1180_v50  }
 0x139   :  { %485 = vperm.xlu1 %869, %v1183_v52   ;;  %366 = vperm.xlu2 %867, %v324_v20   ;;  %v282_v20 = vpack.c.bf16 %v274_v16, %v274_v16 }
 0x13b   :  { %v547_v23 = vunpack.c.l.b16 %v282_v20 }
 0x13d   :  { %v548_v28 = vpack.c.b16 %v547_v23, %v546_v22  ;;  %v352_v23 = vmul.f32 1.442695, %v337_v47 }
 0x13f   :  { %560 = vmatpush.bf16.msrb.mxu0 %v548_v28 }
 0x141   :  { %515 = vperm.xlu1 %869, %v1188_v58   ;;  %490 = vperm.xlu2 %867, %v1186_v57  }
 0x149   :  { %500 = vperm.xlu1 %869, %v1194_v60   ;;  %510 = vperm.xlu2 %867, %v1192_v59  }
 0x179   :  { %v377_v62 = vpop.permute.xlu2 %376 }
 0x17a   :  { %v398_v17 = vsub.f32 %v1124_v3, %v377_v62 }
 0x17c   :  { %v410_v27 = vmul.f32 1.442695, %v398_v17 }
 0x181   :  { %v357_v13 = vpop.permute.xlu2 %356 }
 0x182   :  { %v394_v14 = vsub.f32 %v1105_v61, %v357_v13 }
 0x184   :  { %v402_v18 = vmul.f32 1.442695, %v394_v14 }
 0x186   :  { %884 = vpow2.f32 %v402_v18 }
 0x187   :  { %886 = vpow2.f32 %v410_v27 }
 0x18b   :  { %v392_v61 = vpop.permute.xlu2 %391 }
 0x18c   :  { %v1200_v3 = vpop.eup %884  ;;  %v401_v34 = vsub.f32 %v1140_v11, %v392_v61 }
 0x18d   :  { %v434_v37 = vsel %vm297_vm2, %v1200_v3, 0.0  ;;  %v887_v44 = vpop.eup %886  ;;  %v531_v20 = vpack.c.bf16 %v1200_v3, %v1200_v3 }
 0x18e   :  { %435 = vadd.xlane.f32.xlu0 %v434_v37  ;;  %v416_v40 = vmul.f32 1.442695, %v401_v34  ;;  %v446_v51 = vsel %vm297_vm2, %v887_v44, 0.0 }
 0x190   :  { %888 = vpow2.f32 %v416_v40  ;;  %v426_v40 = vmul.f32 %v1183_v52, %v418_v39  ;;  %v425_v52 = vld [vmem:[#allocation4 + $0x38] sm:$0xff]  ;;  %v764_v39 = vld [vmem:[#allocation3 + $0x30] sm:$0xff] }
 0x193   :  { %v387_v46 = vpop.permute.xlu1 %386  ;;  %v367_v48 = vpop.permute.xlu2 %366 }
 0x194   :  { %v400_v49 = vsub.f32 %v1128_v5, %v387_v46  ;;  %v396_v11 = vsub.f32 %v1111_v63, %v367_v48 }
 0x196   :  { %v414_v53 = vmul.f32 1.442695, %v400_v49  ;;  %v406_v54 = vmul.f32 1.442695, %v396_v11  ;;  %447 = vadd.xlane.f32.xlu0 %v446_v51  ;;  %v889_v56 = vpop.eup %888  ;;  %v422_v49 = vld [vmem:[#allocation4 + $0x20] sm:$0xff] }
 0x197   :  { %v538_v6 = vpack.c.bf16 %v889_v56, %v889_v56  ;;  %v455_v5 = vsel %vm297_vm2, %v889_v56, 0.0  ;;  %v430_v11 = vmul.f32 %v1180_v50, %v422_v49 }
 0x198   :  { %890 = vpow2.f32 %v414_v53 }
 0x199   :  { %892 = vpow2.f32 %v406_v54  ;;  %v382_v55 = vpop.permute.xlu0 %381 }
 0x19a   :  { %v399_v62 = vsub.f32 %v1134_v8, %v382_v55  ;;  %v626_v8 = vunpack.c.l.b16 %v538_v6 }
 0x19b   :  { %v362_v0 = vpop.permute.xlu1 %361  ;;  %v1233_v43 = vpop.permute.xlu2 %490 }
 0x19c   :  { %v395_v2 = vsub.f32 %v1120_v1, %v362_v0  ;;  %v412_v4 = vmul.f32 1.442695, %v399_v62  ;;  %v535_v1 = vpack.c.bf16 %v887_v44, %v887_v44  ;;  %v424_v62 = vld [vmem:[#allocation4 + $0x30] sm:$0xff] }
 0x19e   :  { %v891_v9 = vpop.eup %890  ;;  %v404_v63 = vmul.f32 1.442695, %v395_v2  ;;  %894 = vpow2.f32 %v412_v4  ;;  %456 = vadd.xlane.f32.xlu0 %v455_v5  ;;  %v597_v26 = vunpack.c.l.b16 %v535_v1  ;;  %v420_v2 = vld [vmem:[#allocation4 + $0x10] sm:$0xff]  ;;  %v432_v5 = vmul.f32 %v1188_v58, %v424_v62  ;;  %v419_v58 = vld [vmem:[#allocation4 + $0x8] sm:$0xff]  ;;  %v479_v62 = vld [vmem:[#allocation5 + $0x20] sm:$0xff] }
 0x19f   :  { %v893_v10 = vpop.eup %892  ;;  %v537_v12 = vpack.c.bf16 %v891_v9, %v891_v9  ;;  %v452_v13 = vsel %vm297_vm2, %v891_v9, 0.0 }
 0x1a0   :  { %896 = vpow2.f32 %v404_v63  ;;  %453 = vadd.xlane.f32.xlu2 %v452_v13  ;;  %v440_v14 = vsel %vm297_vm2, %v893_v10, 0.0  ;;  %v533_v41 = vpack.c.bf16 %v893_v10, %v893_v10  ;;  %v428_v13 = vmul.f32 %v1169_v42, %v420_v2  ;;  %v423_v42 = vld [vmem:[#allocation4 + $0x28] sm:$0xff]  ;;  %v482_v2 = vld [vmem:[#allocation5 + $0x38] sm:$0xff] }
 0x1a1   :  { %v625_v15 = vunpack.c.l.b16 %v537_v12  ;;  %441 = vadd.xlane.f32.xlu1 %v440_v14  ;;  %v1226_v36 = vpop.permute.xlu0 %495  ;;  %v758_v14 = vld [vmem:[#allocation3] sm:$0xff] }
 0x1a2   :  { %v569_v3 = vunpack.c.l.b16 %v533_v41 }
 0x1a3   :  { %v372_v16 = vpop.permute.xlu1 %371  ;;  %v627_v17 = vpack.c.b16 %v626_v8, %v625_v15  ;;  %v1239_v54 = vpop.permute.xlu2 %510 }
 0x1a4   :  { %v895_v18 = vpop.eup %894  ;;  %v397_v19 = vsub.f32 %v1132_v7, %v372_v16  ;;  %v541_v7 = vunpack.c.l.b16 %v531_v20 }
 0x1a5   :  { %v536_v21 = vpack.c.bf16 %v895_v18, %v895_v18  ;;  %853 = vmatmul.msk.bf16.vlgmr.msrb.gmra.mxu3 %vm297_vm2, %v627_v17  ;;  %v449_v25 = vsel %vm297_vm2, %v895_v18, 0.0  ;;  %v427_v18 = vmul.f32 %v1186_v57, %v419_v58 }
 0x1a6   :  { %v897_v22 = vpop.eup %896  ;;  %v408_v24 = vmul.f32 1.442695, %v397_v19 }
 0x1a7   :  { %v532_v27 = vpack.c.bf16 %v897_v22, %v897_v22  ;;  %v598_v28 = vunpack.c.l.b16 %v536_v21  ;;  %v437_v29 = vsel %vm297_vm2, %v897_v22, 0.0 }
 0x1a8   :  { %898 = vpow2.f32 %v408_v24  ;;  %438 = vadd.xlane.f32.xlu2 %v437_v29  ;;  %v762_v24 = vld [vmem:[#allocation3 + $0x20] sm:$0xff] }
 0x1a9   :  { %v542_v30 = vunpack.c.l.b16 %v532_v27  ;;  %450 = vadd.xlane.f32.xlu1 %v449_v25  ;;  %v599_v61 = vpack.c.b16 %v598_v28, %v597_v26  ;;  %900 = vpow2.f32 %v352_v23  ;;  %v1230_v38 = vpop.permute.xlu0 %505  ;;  %v431_v23 = vmul.f32 %v1192_v59, %v423_v42  ;;  %v421_v59 = vld [vmem:[#allocation4 + $0x18] sm:$0xff] }
 0x1ab   :  { %v543_v31 = vpack.c.b16 %v542_v30, %v541_v7  ;;  %852 = vmatmul.msk.bf16.vlgmr.msrb.gmra.mxu2 %vm297_vm2, %v599_v61  ;;  %v1228_v37 = vpop.permute.xlu1 %485  ;;  %v429_v30 = vmul.f32 %v1194_v60, %v421_v59  ;;  %v761_v59 = vld [vmem:[#allocation3 + $0x18] sm:$0xff] }
 0x1ad   :  { %850 = vmatmul.msk.bf16.vlgmr.msrb.gmra.mxu0 %vm297_vm2, %v543_v31 }
 0x1ae   :  { %v899_v45 = vpop.eup %898 }
 0x1af   :  { %v534_v47 = vpack.c.bf16 %v899_v45, %v899_v45  ;;  %v443_v32 = vsel %vm297_vm2, %v899_v45, 0.0  ;;  %v901_v33 = vpop.eup %900  ;;  %v765_v45 = vld [vmem:[#allocation3 + $0x38] sm:$0xff] }
 0x1b0   :  { %444 = vadd.xlane.f32.xlu2 %v443_v32  ;;  %v433_v0 = vmul.f32 %v901_v33, %v425_v52 }
 0x1b1   :  { %v570_v34 = vunpack.c.l.b16 %v534_v47  ;;  %v481_v47 = vld [vmem:[#allocation5 + $0x30] sm:$0xff] }
 0x1b2   :  { %520 = vperm.xlu0 %868, %v901_v33  }
 0x1b3   :  { %v571_v35 = vpack.c.b16 %v570_v34, %v569_v3  ;;  %v1235_v46 = vpop.permute.xlu1 %515 }
 0x1b5   :  { %851 = vmatmul.msk.bf16.vlgmr.msrb.gmra.mxu1 %vm297_vm2, %v571_v35 }
 0x1bb   :  { %v1241_v56 = vpop.permute.xlu1 %500 }
 0x201   :  { %v436_v44 = vpop.xlane.xlu0 %435 }
 0x202   :  { %v458_v48 = vadd.f32 %v436_v44, %v426_v40  ;;  %v475_v40 = vld [vmem:[#allocation5] sm:$0xff] }
 0x204   :  { %467 = vst.msk [vmem:[#allocation4] sm:$0xff] %vm102_vm3, %v458_v48  ;;  %v529_v48 = vmul.f32 %v1235_v46, %v481_v47 }
 0x209   :  { %v448_v51 = vpop.xlane.xlu0 %447 }
 0x20a   :  { %v462_v53 = vadd.f32 %v448_v51, %v430_v11  ;;  %v760_v51 = vld [vmem:[#allocation3 + $0x10] sm:$0xff] }
 0x20b   :  { %v766_v55 = vld [vmem:[#allocation4] sm:$0xff] }
 0x20c   :  { %902 = vlog2.f32 %v766_v55  ;;  %471 = vst.msk [vmem:[#allocation4 + $0x20] sm:$0xff] %vm102_vm3, %v462_v53 }
 0x20d   :  { %904 = vrcp.f32 %v766_v55  ;;  %v523_v55 = vmul.f32 %v1228_v37, %v475_v40 }
 0x211   :  { %v457_v4 = vpop.xlane.xlu0 %456 }
 0x212   :  { %v903_v6 = vpop.eup %902  ;;  %v465_v50 = vadd.f32 %v457_v4, %v433_v0 }
 0x213   :  { %v905_v9 = vpop.eup %904  ;;  %v775_v63 = vmul.f32 0.6931472, %v903_v6  ;;  %v770_v10 = vld [vmem:[#allocation4 + $0x20] sm:$0xff]  ;;  %v454_v12 = vpop.xlane.xlu2 %453 }
 0x214   :  { %906 = vlog2.f32 %v770_v10  ;;  %v464_v8 = vadd.f32 %v454_v12, %v432_v5  ;;  %474 = vst.msk [vmem:[#allocation4 + $0x38] sm:$0xff] %vm102_vm3, %v465_v50  ;;  %v442_v15 = vpop.xlane.xlu1 %441  ;;  %704 = vperm.xlu2 %867, %v905_v9   ;;  %v527_v50 = vmul.f32 %v1230_v38, %v479_v62  ;;  %v759_v12 = vld [vmem:[#allocation3 + $0x8] sm:$0xff] }
 0x215   :  { %v790_v1 = vadd.f32 %v775_v63, %v758_v14  ;;  %v460_v16 = vadd.f32 %v442_v15, %v428_v13  ;;  %908 = vrcp.f32 %v770_v10  ;;  %v476_v13 = vld [vmem:[#allocation5 + $0x8] sm:$0xff]  ;;  %v477_v14 = vld [vmem:[#allocation5 + $0x10] sm:$0xff] }
 0x216   :  { %473 = vst.msk [vmem:[#allocation4 + $0x30] sm:$0xff] %vm102_vm3, %v464_v8  ;;  %v763_v38 = vld [vmem:[#allocation3 + $0x28] sm:$0xff] }
 0x217   :  { %798 = vst.msk [vmem:[%s1328_s4] sm:$0xff] %vm102_vm3, %v790_v1 }
 0x218   :  { %469 = vst.msk [vmem:[#allocation4 + $0x10] sm:$0xff] %vm102_vm3, %v460_v16 }
 0x21a   :  { %v907_v17 = vpop.eup %906 }
 0x21b   :  { %v909_v19 = vpop.eup %908  ;;  %v783_v20 = vmul.f32 0.6931472, %v907_v17  ;;  %v1254_v21 = vld [vmem:[#allocation4 + $0x38] sm:$0xff]  ;;  %v439_v22 = vpop.xlane.xlu2 %438 }
 0x21c   :  { %910 = vlog2.f32 %v1254_v21  ;;  %v459_v25 = vadd.f32 %v439_v22, %v427_v18  ;;  %v451_v26 = vpop.xlane.xlu1 %450  ;;  %724 = vperm.xlu1 %869, %v909_v19   ;;  %v524_v18 = vmul.f32 %v1233_v43, %v476_v13  ;;  %v525_v19 = vmul.f32 %v1226_v36, %v477_v14  ;;  %v480_v22 = vld [vmem:[#allocation5 + $0x28] sm:$0xff] }
 0x21d   :  { %v794_v27 = vadd.f32 %v783_v20, %v762_v24  ;;  %v1258_v28 = vld [vmem:[#allocation4 + $0x30] sm:$0xff]  ;;  %v463_v29 = vadd.f32 %v451_v26, %v431_v23 }
 0x21e   :  { %912 = vlog2.f32 %v1258_v28  ;;  %468 = vst.msk [vmem:[#allocation4 + $0x8] sm:$0xff] %vm102_vm3, %v459_v25 }
 0x21f   :  { %802 = vst.msk [vmem:[%s1328_s4 + $0x20] sm:$0xff] %vm102_vm3, %v794_v27  ;;  %v768_v57 = vld [vmem:[#allocation4 + $0x10] sm:$0xff] }
 0x220   :  { %914 = vlog2.f32 %v768_v57  ;;  %472 = vst.msk [vmem:[#allocation4 + $0x28] sm:$0xff] %vm102_vm3, %v463_v29  ;;  %v528_v29 = vmul.f32 %v1239_v54, %v480_v22 }
 0x221   :  { %916 = vrcp.f32 %v768_v57 }
 0x222   :  { %v911_v7 = vpop.eup %910 }
 0x223   :  { %v789_v61 = vmul.f32 0.6931472, %v911_v7  ;;  %v445_v31 = vpop.xlane.xlu2 %444  ;;  %v478_v7 = vld [vmem:[#allocation5 + $0x18] sm:$0xff] }
 0x224   :  { %v913_v41 = vpop.eup %912  ;;  %v461_v32 = vadd.f32 %v445_v31, %v429_v30  ;;  %v521_v4 = vpop.permute.xlu0 %520 }
 0x225   :  { %v787_v33 = vmul.f32 0.6931472, %v913_v41  ;;  %v797_v3 = vadd.f32 %v789_v61, %v765_v45  ;;  %v767_v34 = vld [vmem:[#allocation4 + $0x8] sm:$0xff]  ;;  %v530_v8 = vmul.f32 %v521_v4, %v482_v2  ;;  %v526_v41 = vmul.f32 %v1241_v56, %v478_v7 }
 0x226   :  { %v915_v35 = vpop.eup %914  ;;  %918 = vlog2.f32 %v767_v34  ;;  %470 = vst.msk [vmem:[#allocation4 + $0x18] sm:$0xff] %vm102_vm3, %v461_v32 }
 0x227   :  { %v917_v44 = vpop.eup %916  ;;  %v796_v49 = vadd.f32 %v787_v33, %v764_v39  ;;  %805 = vst.msk [vmem:[%s1328_s4 + $0x38] sm:$0xff] %vm102_vm3, %v797_v3  ;;  %v779_v60 = vmul.f32 0.6931472, %v915_v35  ;;  %v771_v11 = vld [vmem:[#allocation4 + $0x28] sm:$0xff]  ;;  %920 = vrcp.f32 %v767_v34 }
 0x228   :  { %922 = vlog2.f32 %v771_v11  ;;  %714 = vperm.xlu0 %868, %v917_v44   ;;  %v646_v53 = vpop.f32.mrf.mxu3 }
 0x229   :  { %804 = vst.msk [vmem:[%s1328_s4 + $0x30] sm:$0xff] %vm102_vm3, %v796_v49  ;;  %v792_v46 = vadd.f32 %v779_v60, %v760_v51  ;;  %v657_v52 = vadd.f32 %v646_v53, %v529_v48  ;;  %924 = vrcp.f32 %v771_v11 }
 0x22a   :  { %v562_v0 = vpop.f32.mrf.mxu0  ;;  %926 = vrcp.f32 %v1254_v21 }
 0x22b   :  { %800 = vst.msk [vmem:[%s1328_s4 + $0x10] sm:$0xff] %vm102_vm3, %v792_v46  ;;  %v651_v6 = vadd.f32 %v562_v0, %v523_v55 }
 0x22c   :  { %v919_v5 = vpop.eup %918  ;;  %665 = vst.msk [vmem:[#allocation5 + $0x30] sm:$0xff] %vm119_vm0, %v657_v52 }
 0x22d   :  { %v921_v37 = vpop.eup %920  ;;  %v777_v9 = vmul.f32 0.6931472, %v919_v5  ;;  %v769_v63 = vld [vmem:[#allocation4 + $0x18] sm:$0xff]  ;;  %659 = vst.msk [vmem:[#allocation5] sm:$0xff] %vm119_vm0, %v651_v6 }
 0x22e   :  { %v923_v10 = vpop.eup %922  ;;  %928 = vlog2.f32 %v769_v63  ;;  %709 = vperm.xlu1 %869, %v921_v37   ;;  %v618_v15 = vpop.f32.mrf.mxu2 }
 0x22f   :  { %v925_v1 = vpop.eup %924  ;;  %v791_v16 = vadd.f32 %v777_v9, %v759_v12  ;;  %v785_v58 = vmul.f32 0.6931472, %v923_v10  ;;  %v655_v42 = vadd.f32 %v618_v15, %v527_v50  ;;  %930 = vrcp.f32 %v769_v63 }
 0x230   :  { %729 = vperm.xlu0 %868, %v925_v1   ;;  %v648_v17 = vpop.f32.mrf.mxu3  ;;  %v927_v25 = vpop.eup %926  ;;  %932 = vrcp.f32 %v1258_v28 }
 0x231   :  { %799 = vst.msk [vmem:[%s1328_s4 + $0x8] sm:$0xff] %vm102_vm3, %v791_v16  ;;  %v795_v20 = vadd.f32 %v785_v58, %v763_v38  ;;  %v658_v21 = vadd.f32 %v648_v17, %v530_v8 }
 0x232   :  { %v564_v23 = vpop.f32.mrf.mxu0  ;;  %v590_v24 = vpop.f32.mrf.mxu1  ;;  %663 = vst.msk [vmem:[#allocation5 + $0x20] sm:$0xff] %vm119_vm0, %v655_v42 }
 0x233   :  { %803 = vst.msk [vmem:[%s1328_s4 + $0x28] sm:$0xff] %vm102_vm3, %v795_v20  ;;  %v652_v43 = vadd.f32 %v564_v23, %v524_v18  ;;  %v653_v36 = vadd.f32 %v590_v24, %v525_v19  ;;  %v700_v44 = vld [vmem:[#allocation5 + $0x30] sm:$0xff] }
 0x234   :  { %v929_v26 = vpop.eup %928  ;;  %666 = vst.msk [vmem:[#allocation5 + $0x38] sm:$0xff] %vm119_vm0, %v658_v21  ;;  %v694_v32 = vld [vmem:[#allocation5] sm:$0xff] }
 0x235   :  { %v931_v27 = vpop.eup %930  ;;  %v781_v57 = vmul.f32 0.6931472, %v929_v26  ;;  %660 = vst.msk [vmem:[#allocation5 + $0x8] sm:$0xff] %vm119_vm0, %v652_v43 }
 0x236   :  { %661 = vst.msk [vmem:[#allocation5 + $0x10] sm:$0xff] %vm119_vm0, %v653_v36  ;;  %739 = vperm.xlu1 %869, %v927_v25   ;;  %719 = vperm.xlu2 %867, %v931_v27   ;;  %v620_v30 = vpop.f32.mrf.mxu2  ;;  %v933_v47 = vpop.eup %932 }
 0x237   :  { %v793_v61 = vadd.f32 %v781_v57, %v761_v59  ;;  %v656_v31 = vadd.f32 %v620_v30, %v528_v29 }
 0x239   :  { %801 = vst.msk [vmem:[%s1328_s4 + $0x18] sm:$0xff] %vm102_vm3, %v793_v61  ;;  %v698_v28 = vld [vmem:[#allocation5 + $0x20] sm:$0xff]  ;;  %s1044_s4 = smov [#allocation12]  }
 0x23a   :  { %v592_v54 = vpop.f32.mrf.mxu1  ;;  %664 = vst.msk [vmem:[#allocation5 + $0x28] sm:$0xff] %vm119_vm0, %v656_v31  ;;  %s810_s19 = sshll.u32 %s1044_s4, 4  ;;  %s811_s19 = int_to_ptr.vmem [resolvable:$true] %s810_s19 }
 0x23b   :  { %v654_v45 = vadd.f32 %v592_v54, %v526_v41  ;;  %v701_v2 = vld [vmem:[#allocation5 + $0x38] sm:$0xff] }
 0x23c   :  { %v695_v53 = vld [vmem:[#allocation5 + $0x8] sm:$0xff] }
 0x23d   :  { %662 = vst.msk [vmem:[#allocation5 + $0x18] sm:$0xff] %vm119_vm0, %v654_v45  ;;  %v696_v60 = vld [vmem:[#allocation5 + $0x10] sm:$0xff] }
 0x23e   :  { %734 = vperm.xlu2 %867, %v933_v47  }
 0x241   :  { %v699_v62 = vld [vmem:[#allocation5 + $0x28] sm:$0xff] }
 0x244   :  { %v697_v35 = vld [vmem:[#allocation5 + $0x18] sm:$0xff] }
 0x26e   :  { %v705_v33 = vpop.permute.xlu2 %704 }
 0x26f   :  { %v742_v3 = vmul.f32 %v705_v33, %v694_v32 }
 0x271   :  { %750 = vst.msk [vmem:[#allocation12] sm:$0xff] %vm119_vm0, %v742_v3 }
 0x28e   :  { %v725_v56 = vpop.permute.xlu1 %724 }
 0x28f   :  { %v746_v34 = vmul.f32 %v725_v56, %v698_v28 }
 0x290   :  { %v720_v39 = vpop.permute.xlu2 %719 }
 0x291   :  { %v745_v40 = vmul.f32 %v720_v39, %v697_v35  ;;  %754 = vst.msk [vmem:[#allocation12 + $0x20] sm:$0xff] %vm119_vm0, %v746_v34 }
 0x293   :  { %753 = vst.msk [vmem:[#allocation12 + $0x18] sm:$0xff] %vm119_vm0, %v745_v40 }
 0x298   :  { %v735_v48 = vpop.permute.xlu2 %734 }
 0x299   :  { %v748_v49 = vmul.f32 %v735_v48, %v700_v44 }
 0x29a   :  { %v715_v11 = vpop.permute.xlu0 %714 }
 0x29b   :  { %756 = vst.msk [vmem:[#allocation12 + $0x30] sm:$0xff] %vm119_vm0, %v748_v49  ;;  %v744_v51 = vmul.f32 %v715_v11, %v696_v60 }
 0x29d   :  { %752 = vst.msk [vmem:[#allocation12 + $0x10] sm:$0xff] %vm119_vm0, %v744_v51 }
 0x2a0   :  { %v710_v55 = vpop.permute.xlu1 %709 }
 0x2a1   :  { %v743_v46 = vmul.f32 %v710_v55, %v695_v53 }
 0x2a2   :  { %v730_v52 = vpop.permute.xlu0 %729 }
 0x2a3   :  { %751 = vst.msk [vmem:[#allocation12 + $0x8] sm:$0xff] %vm119_vm0, %v743_v46  ;;  %v747_v0 = vmul.f32 %v730_v52, %v699_v62 }
 0x2a5   :  { %755 = vst.msk [vmem:[#allocation12 + $0x28] sm:$0xff] %vm119_vm0, %v747_v0 }
 0x2a8   :  { %v740_v4 = vpop.permute.xlu1 %739 }
 0x2a9   :  { %v749_v6 = vmul.f32 %v740_v4, %v701_v2 }
 0x2ab   :  { %757 = vst.msk [vmem:[#allocation12 + $0x38] sm:$0xff] %vm119_vm0, %v749_v6 }
 0x2ac   :  { %818 = dma.vmem_to_hbm [thread:$0]  %s811_s19, 1024, %s813_s22, [#allocation8], %s1037_s23, %s1037_s23, %s1038_s24  }
 0x2ad   :  { %1034 = dma.done.wait [#allocation8], 1024  }
 0x2ae   :  { %1035 = vsyncadd [#allocation8], 4294966272 }
 0x2af   :  { %827 = vsyncpa [#allocation7], 1 }
 0x2b0   :  { %828 = vsyncpa [#allocation10], 1 }
 0x2b1   :  { %829 = vsyncpa [#allocation8], 1 }

</bundles_post_ra>
